<compile_context>
chip_gen: v6e
topology: v6e:2x2x1
jax: 0.10.0
libtpu: 0.0.40
codegen_flags: <defaults>
</compile_context>

<pallas_src>
import functools

import jax
import jax.numpy as jnp
from jax.experimental import pallas as pl
from jax.experimental.pallas import tpu as pltpu


def _round_up(a, b):
    return (a + b - 1) // b * b


# --------------------------------------------------------------------------- #
# Fully fused kernel: Linear -> tanh -> Linear -> BatchNorm1d(batch stats) -> ReLU
# --------------------------------------------------------------------------- #
def _line_cls_kernel(x_ref, w1_ref, b1_ref, w2_ref, b2_ref, gamma_ref, beta_ref,
                     out_ref, ssum_ref, ssq_ref, *, tm, m_valid, eps, use_bf16):
    i = pl.program_id(0)

    @pl.when(i == 0)
    def _init():
        ssum_ref[...] = jnp.zeros_like(ssum_ref)
        ssq_ref[...] = jnp.zeros_like(ssq_ref)

    x = x_ref[...]                                  # (tm, inp_dim)
    w1 = w1_ref[...]                                # (inp_dim, hidden)
    w2 = w2_ref[...]                                # (hidden, cat_num)
    if use_bf16:                                    # v6e/v7x MXU fast path
        x = x.astype(jnp.bfloat16)
        w1 = w1.astype(jnp.bfloat16)

    mid = jnp.tanh(
        jnp.dot(x, w1, preferred_element_type=jnp.float32) + b1_ref[...])
    if use_bf16:
        mid = mid.astype(jnp.bfloat16)
        w2 = w2.astype(jnp.bfloat16)
    z = jnp.dot(mid, w2, preferred_element_type=jnp.float32) + b2_ref[...]

    # Per-channel partial statistics; padded rows (>= m_valid) are masked out.
    # TODO(synk): for very large M, switch sum/sumsq to a compensated/Welford combine.
    row = i * tm + jax.lax.broadcasted_iota(jnp.int32, z.shape, 0)
    valid = (row < m_valid).astype(jnp.float32)
    zv = z * valid
    ssum_ref[...] += jnp.sum(zv, axis=0, keepdims=True)
    ssq_ref[...] += jnp.sum(zv * zv, axis=0, keepdims=True)

    # Stash pre-BN activations into the VMEM-resident output block.
    start = pl.multiple_of(i * tm, tm)
    out_ref[pl.ds(start, tm), :] = z

    # Final grid step: fold BN into per-channel scale/bias, apply + ReLU in place.
    @pl.when(i == pl.num_programs(0) - 1)
    def _finalize():
        inv_m = 1.0 / float(m_valid)
        mean = ssum_ref[...] * inv_m
        var = ssq_ref[...] * inv_m - mean * mean        # biased (training-mode) var
        inv_std = jax.lax.rsqrt(var + eps)
        scale = gamma_ref[...] * inv_std
        bias = beta_ref[...] - mean * scale
        out_ref[...] = jnp.maximum(out_ref[...] * scale + bias, 0.0)


def line_cls_forward(x, w1, b1, w2, b2, gamma, beta, *,
                     eps=1e-5, block_rows=128, use_bf16_matmul=False):
    """Forward of `line_cls`.

    x: (..., inp_dim)   (PyTorch does x.view(-1, fea_dim) first)
    w1: (inp_dim, hidden)   b1: (hidden,)
    w2: (hidden, cat_num)   b2: (cat_num,)
    gamma, beta: (cat_num,)
    Returns (M, cat_num) with M = prod(x.shape[:-1]).
    """
    inp_dim = x.shape[-1]
    x2 = x.reshape(-1, inp_dim).astype(jnp.float32)
    m = x2.shape[0]
    hidden = w1.shape[1]
    cat_num = w2.shape[1]

    # Row tiling (sublane-aligned).  The full output stays VMEM-resident, which
    # is the right call for the small sizes this classifier head runs at.
    tm = min(_round_up(block_rows, 8), _round_up(m, 8))
    m_pad = _round_up(m, tm)
    if m_pad != m:
        # Tiny row-only pad; padded rows are masked out of the BN statistics
        # in-kernel and sliced off below.
        x2 = jnp.pad(x2, ((0, m_pad - m), (0, 0)))
    grid = (m_pad // tm,)

    b1_2d = b1.reshape(1, hidden).astype(jnp.float32)
    b2_2d = b2.reshape(1, cat_num).astype(jnp.float32)
    gamma_2d = gamma.reshape(1, cat_num).astype(jnp.float32)
    beta_2d = beta.reshape(1, cat_num).astype(jnp.float32)

    kernel = functools.partial(_line_cls_kernel, tm=tm, m_valid=m, eps=eps,
                               use_bf16=use_bf16_matmul)

    flops = 2 * m_pad * (inp_dim * hidden + hidden * cat_num)
    bytes_accessed = 4 * (m_pad * inp_dim + inp_dim * hidden + hidden
                          + hidden * cat_num + 3 * cat_num + m_pad * cat_num)

    out = pl.pallas_call(
        kernel,
        out_shape=jax.ShapeDtypeStruct((m_pad, cat_num), jnp.float32),
        grid_spec=pltpu.PrefetchScalarGridSpec(
            num_scalar_prefetch=0,
            grid=grid,
            in_specs=[
                pl.BlockSpec((tm, inp_dim), lambda i: (i, 0)),       # x row tile
                pl.BlockSpec((inp_dim, hidden), lambda i: (0, 0)),   # W1 (VMEM-resident)
                pl.BlockSpec((1, hidden), lambda i: (0, 0)),         # b1
                pl.BlockSpec((hidden, cat_num), lambda i: (0, 0)),   # W2 (VMEM-resident)
                pl.BlockSpec((1, cat_num), lambda i: (0, 0)),        # b2
                pl.BlockSpec((1, cat_num), lambda i: (0, 0)),        # gamma
                pl.BlockSpec((1, cat_num), lambda i: (0, 0)),        # beta
            ],
            # Constant output block index -> output resident in VMEM across the
            # whole grid; exactly one HBM writeback after the final step.
            out_specs=pl.BlockSpec((m_pad, cat_num), lambda i: (0, 0)),
            scratch_shapes=[pltpu.VMEM((1, cat_num), jnp.float32),   # per-channel sum
                            pltpu.VMEM((1, cat_num), jnp.float32)],  # per-channel sumsq
        ),
        compiler_params=pltpu.CompilerParams(
            # The row-tile axis carries the BN-stat accumulation and the
            # resident output -> reduction semantics.
            dimension_semantics=("arbitrary",)),
        cost_estimate=pl.CostEstimate(flops=flops,
                                      transcendentals=m_pad * hidden,
                                      bytes_accessed=bytes_accessed),
    )(x2, w1.astype(jnp.float32), b1_2d, w2.astype(jnp.float32), b2_2d,
      gamma_2d, beta_2d)
    return out[:m]


# --------------------------------------------------------------------------- #
# Pure-JAX reference for verification.
# --------------------------------------------------------------------------- #
def reference_forward(x, w1, b1, w2, b2, gamma, beta, *, eps=1e-5):
    x2 = x.reshape(-1, x.shape[-1])
    mid = jnp.tanh(jnp.dot(x2, w1, precision=jax.lax.Precision.HIGHEST) + b1)
    z = jnp.dot(mid, w2, precision=jax.lax.Precision.HIGHEST) + b2
    mean = jnp.mean(z, axis=0)
    var = jnp.mean((z - mean) ** 2, axis=0)        # biased var (training-mode BN)
    bn = (z - mean) / jnp.sqrt(var + eps) * gamma + beta
    return jnp.maximum(bn, 0.0)


if __name__ == "__main__":
    # Module config: line_cls(inp_dim=32, cat_num=8); input x of shape (B, S, inp_dim).
    B, S, inp_dim, hidden, cat_num = 2, 8, 32, 256, 8

    key = jax.random.PRNGKey(0)
    kx, k1, kb1, k2, kb2, kg, kb = jax.random.split(key, 7)

    x = jax.random.normal(kx, (B, S, inp_dim), jnp.float32)
    w1 = jax.random.normal(k1, (inp_dim, hidden), jnp.float32) / jnp.sqrt(inp_dim)
    b1 = 0.1 * jax.random.normal(kb1, (hidden,), jnp.float32)
    w2 = jax.random.normal(k2, (hidden, cat_num), jnp.float32) / jnp.sqrt(hidden)
    b2 = 0.1 * jax.random.normal(kb2, (cat_num,), jnp.float32)
    gamma = 1.0 + 0.1 * jax.random.normal(kg, (cat_num,), jnp.float32)
    beta = 0.1 * jax.random.normal(kb, (cat_num,), jnp.float32)

    # block_rows=8 -> grid=(2,) at this size, exercising the init/accumulate/
    # finalize path across grid steps.
    out = line_cls_forward(x, w1, b1, w2, b2, gamma, beta, block_rows=8)
    out = jax.block_until_ready(out)

    ref = reference_forward(x, w1, b1, w2, b2, gamma, beta)
    assert out.shape == ref.shape == (B * S, cat_num)
    err = float(jnp.max(jnp.abs(out - ref)))
    # 1e-3 leaves headroom for MXU f32 accumulation-order differences.
    assert err < 1e-3, f"mismatch vs reference: {err}"

    print("KERNEL_OK")
</pallas_src>

<mosaic_0001>
module attributes {stable_mosaic.version = 11 : i64} {
  func.func @_line_cls_kernel(%arg0: i32, %arg1: memref<8x32xf32, #tpu.memory_space<vmem>>, %arg2: memref<32x256xf32, #tpu.memory_space<vmem>>, %arg3: memref<1x256xf32, #tpu.memory_space<vmem>>, %arg4: memref<256x8xf32, #tpu.memory_space<vmem>>, %arg5: memref<1x8xf32, #tpu.memory_space<vmem>>, %arg6: memref<1x8xf32, #tpu.memory_space<vmem>>, %arg7: memref<1x8xf32, #tpu.memory_space<vmem>>, %arg8: memref<16x8xf32, #tpu.memory_space<vmem>>, %arg9: memref<1x8xf32, #tpu.memory_space<vmem>>, %arg10: memref<1x8xf32, #tpu.memory_space<vmem>>) attributes {dimension_semantics = [#tpu.dimension_semantics<arbitrary>], iteration_bounds = array<i64: 2>, scalar_prefetch = 0 : i64, scratch_operands = 2 : i64, tpu.core_type = #tpu.core_type<tc>, window_params = [{transform_indices = @transform_0, window_bounds = array<i64: 8, 32>}, {pipeline_mode = #tpu.pipeline_mode<synchronous>, transform_indices = @transform_1, window_bounds = array<i64: 32, 256>}, {pipeline_mode = #tpu.pipeline_mode<synchronous>, transform_indices = @transform_2, window_bounds = array<i64: 1, 256>}, {pipeline_mode = #tpu.pipeline_mode<synchronous>, transform_indices = @transform_3, window_bounds = array<i64: 256, 8>}, {pipeline_mode = #tpu.pipeline_mode<synchronous>, transform_indices = @transform_4, window_bounds = array<i64: 1, 8>}, {pipeline_mode = #tpu.pipeline_mode<synchronous>, transform_indices = @transform_5, window_bounds = array<i64: 1, 8>}, {pipeline_mode = #tpu.pipeline_mode<synchronous>, transform_indices = @transform_6, window_bounds = array<i64: 1, 8>}, {pipeline_mode = #tpu.pipeline_mode<synchronous>, transform_indices = @transform_7, window_bounds = array<i64: 16, 8>}]} {
    %c0_i32 = arith.constant 0 : i32
    %0 = arith.cmpi eq, %arg0, %c0_i32 : i32
    %1 = arith.extui %0 : i1 to i32
    %c0_i32_0 = arith.constant 0 : i32
    %2 = arith.cmpi ne, %1, %c0_i32_0 : i32
    scf.if %2 {
      %cst_24 = arith.constant 0.000000e+00 : f32
      %42 = vector.broadcast %cst_24 : f32 to vector<1x8xf32>
      %c0_25 = arith.constant 0 : index
      %c0_26 = arith.constant 0 : index
      %43 = vector.load %arg9[%c0_25, %c0_26] : memref<1x8xf32, #tpu.memory_space<vmem>>, vector<1x8xf32>
      tpu.vector_store %arg9[%c0_25, %c0_26], %42 {strides = array<i32>} : memref<1x8xf32, #tpu.memory_space<vmem>>, vector<1x8xf32>,
      %cst_27 = arith.constant 0.000000e+00 : f32
      %44 = vector.broadcast %cst_27 : f32 to vector<1x8xf32>
      %c0_28 = arith.constant 0 : index
      %c0_29 = arith.constant 0 : index
      %45 = vector.load %arg10[%c0_28, %c0_29] : memref<1x8xf32, #tpu.memory_space<vmem>>, vector<1x8xf32>
      tpu.vector_store %arg10[%c0_28, %c0_29], %44 {strides = array<i32>} : memref<1x8xf32, #tpu.memory_space<vmem>>, vector<1x8xf32>,
    } else {
    }
    %c0 = arith.constant 0 : index
    %c0_1 = arith.constant 0 : index
    %3 = vector.load %arg1[%c0, %c0_1] : memref<8x32xf32, #tpu.memory_space<vmem>>, vector<8x32xf32>
    %c0_2 = arith.constant 0 : index
    %c0_3 = arith.constant 0 : index
    %4 = vector.load %arg2[%c0_2, %c0_3] : memref<32x256xf32, #tpu.memory_space<vmem>>, vector<32x256xf32>
    %c0_4 = arith.constant 0 : index
    %c0_5 = arith.constant 0 : index
    %5 = vector.load %arg4[%c0_4, %c0_5] : memref<256x8xf32, #tpu.memory_space<vmem>>, vector<256x8xf32>
    %cst = arith.constant dense<0.000000e+00> : vector<8x256xf32>
    %6 = tpu.matmul %3, %4, %cst {dimension_numbers = #tpu.dot_dimension_numbers<[1], [0], [0], [1], [0, 0, 1, 1], [], []>} : vector<8x32xf32>, vector<32x256xf32>, vector<8x256xf32> -> vector<8x256xf32>
    %c0_6 = arith.constant 0 : index
    %c0_7 = arith.constant 0 : index
    %7 = vector.load %arg3[%c0_6, %c0_7] : memref<1x256xf32, #tpu.memory_space<vmem>>, vector<1x256xf32>
    %8 = vector.broadcast %7 : vector<1x256xf32> to vector<8x256xf32>
    %9 = arith.addf %6, %8 : vector<8x256xf32>
    %10 = math.tanh %9 : vector<8x256xf32>
    %cst_8 = arith.constant dense<0.000000e+00> : vector<8x8xf32>
    %11 = tpu.matmul %10, %5, %cst_8 {dimension_numbers = #tpu.dot_dimension_numbers<[1], [0], [0], [1], [0, 0, 1, 1], [], []>} : vector<8x256xf32>, vector<256x8xf32>, vector<8x8xf32> -> vector<8x8xf32>
    %c0_9 = arith.constant 0 : index
    %c0_10 = arith.constant 0 : index
    %12 = vector.load %arg5[%c0_9, %c0_10] : memref<1x8xf32, #tpu.memory_space<vmem>>, vector<1x8xf32>
    %13 = vector.broadcast %12 : vector<1x8xf32> to vector<8x8xf32>
    %14 = arith.addf %11, %13 : vector<8x8xf32>
    %c8_i32 = arith.constant 8 : i32
    %15 = arith.muli %arg0, %c8_i32 : i32
    %16 = tpu.iota {dimensions = array<i32: 0>} : vector<8x8xi32>
    %17 = vector.broadcast %15 : i32 to vector<8x8xi32>
    %18 = arith.addi %17, %16 : vector<8x8xi32>
    %c16_i32 = arith.constant 16 : i32
    %19 = vector.broadcast %c16_i32 : i32 to vector<8x8xi32>
    %20 = arith.cmpi slt, %18, %19 : vector<8x8xi32>
    %21 = arith.extui %20 : vector<8x8xi1> to vector<8x8xi32>
    %22 = arith.sitofp %21 : vector<8x8xi32> to vector<8x8xf32>
    %23 = arith.mulf %14, %22 : vector<8x8xf32>
    %c0_11 = arith.constant 0 : index
    %c0_12 = arith.constant 0 : index
    %24 = vector.load %arg9[%c0_11, %c0_12] : memref<1x8xf32, #tpu.memory_space<vmem>>, vector<1x8xf32>
    %cst_13 = arith.constant dense<0.000000e+00> : vector<8xf32>
    %25 = vector.multi_reduction <add>, %23, %cst_13 [0] : vector<8x8xf32> to vector<8xf32>
    %26 = vector.shape_cast %25 : vector<8xf32> to vector<1x8xf32>
    %27 = arith.addf %24, %26 : vector<1x8xf32>
    %c0_14 = arith.constant 0 : index
    %c0_15 = arith.constant 0 : index
    %28 = vector.load %arg9[%c0_14, %c0_15] : memref<1x8xf32, #tpu.memory_space<vmem>>, vector<1x8xf32>
    tpu.vector_store %arg9[%c0_14, %c0_15], %27 {strides = array<i32>} : memref<1x8xf32, #tpu.memory_space<vmem>>, vector<1x8xf32>,
    %c0_16 = arith.constant 0 : index
    %c0_17 = arith.constant 0 : index
    %29 = vector.load %arg10[%c0_16, %c0_17] : memref<1x8xf32, #tpu.memory_space<vmem>>, vector<1x8xf32>
    %30 = arith.mulf %23, %23 : vector<8x8xf32>
    %cst_18 = arith.constant dense<0.000000e+00> : vector<8xf32>
    %31 = vector.multi_reduction <add>, %30, %cst_18 [0] : vector<8x8xf32> to vector<8xf32>
    %32 = vector.shape_cast %31 : vector<8xf32> to vector<1x8xf32>
    %33 = arith.addf %29, %32 : vector<1x8xf32>
    %c0_19 = arith.constant 0 : index
    %c0_20 = arith.constant 0 : index
    %34 = vector.load %arg10[%c0_19, %c0_20] : memref<1x8xf32, #tpu.memory_space<vmem>>, vector<1x8xf32>
    tpu.vector_store %arg10[%c0_19, %c0_20], %33 {strides = array<i32>} : memref<1x8xf32, #tpu.memory_space<vmem>>, vector<1x8xf32>,
    %c8_i32_21 = arith.constant 8 : i32
    %35 = arith.muli %arg0, %c8_i32_21 : i32
    %36 = tpu.assume_multiple %35, 8 : i32
    %37 = arith.index_cast %36 : i32 to index
    %c0_22 = arith.constant 0 : index
    %38 = vector.load %arg8[%37, %c0_22] : memref<16x8xf32, #tpu.memory_space<vmem>>, vector<8x8xf32>
    tpu.vector_store %arg8[%37, %c0_22], %14 {strides = array<i32>} : memref<16x8xf32, #tpu.memory_space<vmem>>, vector<8x8xf32>,
    %c1_i32 = arith.constant 1 : i32
    %39 = arith.cmpi eq, %arg0, %c1_i32 : i32
    %40 = arith.extui %39 : i1 to i32
    %c0_i32_23 = arith.constant 0 : i32
    %41 = arith.cmpi ne, %40, %c0_i32_23 : i32
    scf.if %41 {
      %c0_24 = arith.constant 0 : index
      %c0_25 = arith.constant 0 : index
      %42 = vector.load %arg9[%c0_24, %c0_25] : memref<1x8xf32, #tpu.memory_space<vmem>>, vector<1x8xf32>
      %cst_26 = arith.constant 6.250000e-02 : f32
      %43 = vector.broadcast %cst_26 : f32 to vector<1x8xf32>
      %44 = arith.mulf %42, %43 : vector<1x8xf32>
      %c0_27 = arith.constant 0 : index
      %c0_28 = arith.constant 0 : index
      %45 = vector.load %arg10[%c0_27, %c0_28] : memref<1x8xf32, #tpu.memory_space<vmem>>, vector<1x8xf32>
      %cst_29 = arith.constant 6.250000e-02 : f32
      %46 = vector.broadcast %cst_29 : f32 to vector<1x8xf32>
      %47 = arith.mulf %45, %46 : vector<1x8xf32>
      %48 = arith.mulf %44, %44 : vector<1x8xf32>
      %49 = arith.subf %47, %48 : vector<1x8xf32>
      %cst_30 = arith.constant 9.99999974E-6 : f32
      %50 = vector.broadcast %cst_30 : f32 to vector<1x8xf32>
      %51 = arith.addf %49, %50 : vector<1x8xf32>
      %52 = math.rsqrt %51 : vector<1x8xf32>
      %c0_31 = arith.constant 0 : index
      %c0_32 = arith.constant 0 : index
      %53 = vector.load %arg6[%c0_31, %c0_32] : memref<1x8xf32, #tpu.memory_space<vmem>>, vector<1x8xf32>
      %54 = arith.mulf %53, %52 : vector<1x8xf32>
      %c0_33 = arith.constant 0 : index
      %c0_34 = arith.constant 0 : index
      %55 = vector.load %arg7[%c0_33, %c0_34] : memref<1x8xf32, #tpu.memory_space<vmem>>, vector<1x8xf32>
      %56 = arith.mulf %44, %54 : vector<1x8xf32>
      %57 = arith.subf %55, %56 : vector<1x8xf32>
      %c0_35 = arith.constant 0 : index
      %c0_36 = arith.constant 0 : index
      %58 = vector.load %arg8[%c0_35, %c0_36] : memref<16x8xf32, #tpu.memory_space<vmem>>, vector<16x8xf32>
      %59 = vector.broadcast %54 : vector<1x8xf32> to vector<16x8xf32>
      %60 = arith.mulf %58, %59 : vector<16x8xf32>
      %61 = vector.broadcast %57 : vector<1x8xf32> to vector<16x8xf32>
      %62 = arith.addf %60, %61 : vector<16x8xf32>
      %cst_37 = arith.constant 0.000000e+00 : f32
      %63 = vector.broadcast %cst_37 : f32 to vector<16x8xf32>
      %64 = arith.maximumf %62, %63 : vector<16x8xf32>
      %c0_38 = arith.constant 0 : index
      %c0_39 = arith.constant 0 : index
      %65 = vector.load %arg8[%c0_38, %c0_39] : memref<16x8xf32, #tpu.memory_space<vmem>>, vector<16x8xf32>
      tpu.vector_store %arg8[%c0_38, %c0_39], %64 {strides = array<i32>} : memref<16x8xf32, #tpu.memory_space<vmem>>, vector<16x8xf32>,
    } else {
    }
    return
  }
  func.func @transform_0(%arg0: i32) -> (i32, i32) {
    %c0_i32 = arith.constant 0 : i32
    %c0_i32_0 = arith.constant 0 : i32
    return %arg0, %c0_i32 : i32, i32
  }
  func.func @transform_1(%arg0: i32) -> (i32, i32) {
    %c0_i32 = arith.constant 0 : i32
    %c0_i32_0 = arith.constant 0 : i32
    %c0_i32_1 = arith.constant 0 : i32
    return %c0_i32, %c0_i32_0 : i32, i32
  }
  func.func @transform_2(%arg0: i32) -> (i32, i32) {
    %c0_i32 = arith.constant 0 : i32
    %c0_i32_0 = arith.constant 0 : i32
    %c0_i32_1 = arith.constant 0 : i32
    return %c0_i32, %c0_i32_0 : i32, i32
  }
  func.func @transform_3(%arg0: i32) -> (i32, i32) {
    %c0_i32 = arith.constant 0 : i32
    %c0_i32_0 = arith.constant 0 : i32
    %c0_i32_1 = arith.constant 0 : i32
    return %c0_i32, %c0_i32_0 : i32, i32
  }
  func.func @transform_4(%arg0: i32) -> (i32, i32) {
    %c0_i32 = arith.constant 0 : i32
    %c0_i32_0 = arith.constant 0 : i32
    %c0_i32_1 = arith.constant 0 : i32
    return %c0_i32, %c0_i32_0 : i32, i32
  }
  func.func @transform_5(%arg0: i32) -> (i32, i32) {
    %c0_i32 = arith.constant 0 : i32
    %c0_i32_0 = arith.constant 0 : i32
    %c0_i32_1 = arith.constant 0 : i32
    return %c0_i32, %c0_i32_0 : i32, i32
  }
  func.func @transform_6(%arg0: i32) -> (i32, i32) {
    %c0_i32 = arith.constant 0 : i32
    %c0_i32_0 = arith.constant 0 : i32
    %c0_i32_1 = arith.constant 0 : i32
    return %c0_i32, %c0_i32_0 : i32, i32
  }
  func.func @transform_7(%arg0: i32) -> (i32, i32) {
    %c0_i32 = arith.constant 0 : i32
    %c0_i32_0 = arith.constant 0 : i32
    %c0_i32_1 = arith.constant 0 : i32
    return %c0_i32, %c0_i32_0 : i32, i32
  }
}

</mosaic_0001>

<bundles_post_ra>
// kernel: tpu_custom_call.1
= control target key start
LH: loop header
LB: loop body
LE: loop exit
PB: predicated region body
PF: predicated region fallthrough
CT: control target
= control target key end

     0   :  { %s692_s24 = smov 0   ;;  %s875_s0 = inlined_call_operand.vmem [shape: f32[16,32], index: 0, kind: input, shape index: {}]   ;;  %s876_s1 = inlined_call_operand.vmem [shape: f32[32,256], index: 1, kind: input, shape index: {}]   ;;  %s877_s2 = inlined_call_operand.vmem [shape: f32[1,256], index: 2, kind: input, shape index: {}]   ;;  %s878_s3 = inlined_call_operand.vmem [shape: f32[256,8], index: 3, kind: input, shape index: {}]   ;;  %s879_s4 = inlined_call_operand.vmem [shape: f32[1,8], index: 4, kind: input, shape index: {}]   ;;  %s880_s5 = inlined_call_operand.vmem [shape: f32[1,8], index: 5, kind: input, shape index: {}]   ;;  %s881_s6 = inlined_call_operand.vmem [shape: f32[1,8], index: 6, kind: input, shape index: {}]   ;;  %s882_s7 = inlined_call_operand.vmem [shape: f32[16,8], index: 7, kind: output, shape index: {}]  }
   0x1 LB: > { %s698_s25 = sadd.s32 4294967295, %s648_s24   ;;  %p581_p0 = scmp.ge.s32.totalorder %s648_s24, 1  ;;  %s648_s24 = sphi %s692_s24, %s17_s24  }
   0x2   : > { %p231_p1 = scmp.lt.s32.totalorder %s648_s24, 3 }
   0x4   : > { %p232_p2 = pnand %p581_p0, %p231_p1 }
   0x5   : > { %p257_p3 = scmp.lt.s32.totalorder (!%p232_p2), %s698_s25, 1  ;;  %p583_p4 = scmp.ne.s32.totalorder (!%p232_p2), %s698_s25, 0 }
   0x6   : > { %235 = sbr.rel (%p232_p2) target bundleno = 499 (0x1f3), region = 48 }
   0xb   : > { %s258_s26 = scalar_select %p257_p3, %s698_s25, 1 }
   0xc   : > { %264 = sbr.rel (%p583_p4) target bundleno = 19 (0x13), region = 52 }
   0xd   : > { %s582_s27 = sshll.u32 %s258_s26, 3 }
   0xe   : > { %s707_s30 = scalar_lea.vmem %s875_s0, %s582_s27 }
  0x11   : > { %vm265_vm0 = vcmask 57344   ;;  %v650_v0 = vmov 0.0  }
  0x12   : > { %266 = vst.msk [vmem:[#allocation2] sm:$0x1] %vm265_vm0, %v650_v0  ;;  %267 = vst.msk [vmem:[#allocation3] sm:$0x1] %vm265_vm0, %v650_v0 }
  0x13 PF: > { %v276_v1 = vld [vmem:[%s876_s1 + $0x38] sm:$0xff]  ;;  %v275_v2 = vld [vmem:[%s876_s1 + $0x30] sm:$0xff]  ;;  %v274_v3 = vld [vmem:[%s876_s1 + $0x28] sm:$0xff]  ;;  %v651_v5 = vmov 0.0   ;;  %vm321_vm1 = vcmask 261120   ;;  %v311_v43 = vlaneseq  ;;  %s586_s29 = sshll.u32 %s698_s25, 3 }
  0x14   : > { %349 = vmatprep.subr.mxu0 %v276_v1  ;;  %v273_v4 = vld [vmem:[%s876_s1 + $0x20] sm:$0xff]  ;;  %389 = vmatprep.mubr.f32.mxu0 %v651_v5  ;;  %v272_v6 = vld [vmem:[%s876_s1 + $0x18] sm:$0xff]  ;;  %v271_v7 = vld [vmem:[%s876_s1 + $0x10] sm:$0xff]  ;;  %v478_v56 = vstv %s586_s29  ;;  %s507_s12 = scalar_lea.vmem %s882_s7, %s586_s29  ;;  %vm485_vm3 = vcmask 64512   ;;  %vm494_vm4 = vcmask 57344   ;;  %p588_p5 = scmp.ne.s32.totalorder %s698_s25, 1 }
  0x15   : > { %350 = vmatpush1.msra.mxu0 %v275_v2  ;;  %v308_v8 = vld [vmem:[%s878_s3 + $0xf8] sm:$0xff]  ;;  %v307_v10 = vld [vmem:[%s878_s3 + $0xf0] sm:$0xff]  ;;  %v270_v11 = vld [vmem:[%s876_s1 + $0x8] sm:$0xff]  ;;  %v312_v44 = vshrl.u32 %v311_v43, 7 }
  0x16   : > { %351 = vmatprep.subr.mxu0 %v274_v3  ;;  %v292_v9 = vld [vmem:[%s878_s3 + $0x78] sm:$0xff]  ;;  %591 = vmatprep.subr.mxu1 %v308_v8  ;;  %v291_v12 = vld [vmem:[%s878_s3 + $0x70] sm:$0xff]  ;;  %v269_v13 = vld [vmem:[%s876_s1] sm:$0xff] }
  0x17   : > { %352 = vmatpush1.msra.mxu0 %v273_v4  ;;  %592 = vmatpush3.msra.mxu1 %v292_v9  ;;  %v306_v14 = vld [vmem:[%s878_s3 + $0xe8] sm:$0xff]  ;;  %v268_v15 = vld [vmem:[%s707_s30] sm:$0xff]  ;;  %v304_v19 = vld [vmem:[%s878_s3 + $0xd8] sm:$0xff]  ;;  %v832_v45 = vsub.s32 0, %v312_v44  ;;  %v317_v47 = vsub.s32 1, %v312_v44  ;;  %v479_v57 = vadd.s32 %v478_v56, %v312_v44 }
  0x18   : > { %353 = vmatprep.subr.mxu0 %v272_v6  ;;  %593 = vmatprep.subr.mxu1 %v307_v10  ;;  %v290_v16 = vld [vmem:[%s878_s3 + $0x68] sm:$0xff]  ;;  %v305_v17 = vld [vmem:[%s878_s3 + $0xe0] sm:$0xff]  ;;  %v288_v20 = vld [vmem:[%s878_s3 + $0x58] sm:$0xff] }
  0x19   : > { %354 = vmatpush1.msra.mxu0 %v271_v7  ;;  %594 = vmatpush3.msra.mxu1 %v291_v12  ;;  %v289_v18 = vld [vmem:[%s878_s3 + $0x60] sm:$0xff]  ;;  %v303_v21 = vld [vmem:[%s878_s3 + $0xd0] sm:$0xff]  ;;  %v302_v23 = vld [vmem:[%s878_s3 + $0xc8] sm:$0xff]  ;;  %vm480_vm2 = vcmp.lt.s32.totalorder %v479_v57, 16 }
  0x1a   : > { %355 = vmatprep.subr.mxu0 %v270_v11  ;;  %595 = vmatprep.subr.mxu1 %v306_v14  ;;  %v287_v22 = vld [vmem:[%s878_s3 + $0x50] sm:$0xff]  ;;  %v286_v24 = vld [vmem:[%s878_s3 + $0x48] sm:$0xff]  ;;  %v301_v25 = vld [vmem:[%s878_s3 + $0xc0] sm:$0xff]  ;;  %v587_v62 = vsel %vm480_vm2, 1.0, %v651_v5 }
  0x1b   : > { %356 = vmatpush1.msra.mxu0 %v269_v13  ;;  %596 = vmatpush3.msra.mxu1 %v290_v16  ;;  %v285_v26 = vld [vmem:[%s878_s3 + $0x40] sm:$0xff]  ;;  %v300_v27 = vld [vmem:[%s878_s3 + $0xb8] sm:$0xff]  ;;  %v299_v29 = vld [vmem:[%s878_s3 + $0xb0] sm:$0xff] }
  0x1c   : > { %584 = vmatmul.mubr.msk.f32.vlgmr.msra.gmra.mxu0 %vm321_vm1, %v268_v15  ;;  %597 = vmatprep.subr.mxu1 %v305_v17  ;;  %v284_v28 = vld [vmem:[%s878_s3 + $0x38] sm:$0xff]  ;;  %v283_v30 = vld [vmem:[%s878_s3 + $0x30] sm:$0xff]  ;;  %v298_v31 = vld [vmem:[%s878_s3 + $0xa8] sm:$0xff] }
  0x1d   : > { %598 = vmatpush3.msra.mxu1 %v289_v18  ;;  %v282_v32 = vld [vmem:[%s878_s3 + $0x28] sm:$0xff]  ;;  %v297_v33 = vld [vmem:[%s878_s3 + $0xa0] sm:$0xff]  ;;  %v296_v35 = vld [vmem:[%s878_s3 + $0x98] sm:$0xff] }
  0x1e   : > { %599 = vmatprep.subr.mxu1 %v304_v19  ;;  %v281_v34 = vld [vmem:[%s878_s3 + $0x20] sm:$0xff]  ;;  %v280_v36 = vld [vmem:[%s878_s3 + $0x18] sm:$0xff]  ;;  %v295_v37 = vld [vmem:[%s878_s3 + $0x90] sm:$0xff] }
  0x1f   : > { %600 = vmatpush3.msra.mxu1 %v288_v20  ;;  %v279_v38 = vld [vmem:[%s878_s3 + $0x10] sm:$0xff]  ;;  %v294_v39 = vld [vmem:[%s878_s3 + $0x88] sm:$0xff]  ;;  %v293_v41 = vld [vmem:[%s878_s3 + $0x80] sm:$0xff] }
  0x20   : > { %601 = vmatprep.subr.mxu1 %v303_v21  ;;  %v278_v40 = vld [vmem:[%s878_s3 + $0x8] sm:$0xff]  ;;  %v277_v42 = vld [vmem:[%s878_s3] sm:$0xff] }
  0x21   : > { %602 = vmatpush3.msra.mxu1 %v287_v22  ;;  %v309_v46 = vld [vmem:[%s877_s2] sm:$0x3] }
  0x22   : > { %603 = vmatprep.subr.mxu1 %v302_v23  ;;  %v314_v48 = vrot.slane %v309_v46, %v832_v45  ;;  %v318_v49 = vrot.slane %v309_v46, %v317_v47  ;;  %v585_v59 = vld [vmem:[%s879_s4] ss:$0 sm:$0xff]  ;;  %v496_v16 = vld [vmem:[#allocation3] sm:$0x1] }
  0x23   : > { %604 = vmatpush3.msra.mxu1 %v286_v24  ;;  %v484_v13 = vld [vmem:[#allocation2] sm:$0x1] }
  0x24   : > { %605 = vmatprep.subr.mxu1 %v301_v25 }
  0x25   : > { %606 = vmatpush3.msra.mxu1 %v285_v26 }
  0x26   : > { %607 = vmatprep.subr.mxu1 %v300_v27 }
  0x27   : > { %608 = vmatpush3.msra.mxu1 %v284_v28 }
  0x28   : > { %609 = vmatprep.subr.mxu1 %v299_v29 }
  0x29   : > { %610 = vmatpush3.msra.mxu1 %v283_v30 }
  0x2a   : > { %611 = vmatprep.subr.mxu1 %v298_v31 }
  0x2b   : > { %612 = vmatpush3.msra.mxu1 %v282_v32 }
  0x2c   : > { %613 = vmatprep.subr.mxu1 %v297_v33 }
  0x2d   : > { %614 = vmatpush3.msra.mxu1 %v281_v34 }
  0x2e   : > { %615 = vmatprep.subr.mxu1 %v296_v35 }
  0x2f   : > { %616 = vmatpush3.msra.mxu1 %v280_v36 }
  0x30   : > { %617 = vmatprep.subr.mxu1 %v295_v37 }
  0x31   : > { %618 = vmatpush3.msra.mxu1 %v279_v38 }
  0x32   : > { %619 = vmatprep.subr.mxu1 %v294_v39 }
  0x33   : > { %620 = vmatpush3.msra.mxu1 %v278_v40 }
  0x34   : > { %621 = vmatprep.subr.mxu1 %v293_v41 }
  0x35   : > { %622 = vmatpush3.msra.mxu1 %v277_v42 }
  0xdc   : > { %v391_v50 = vpop.f32.mrf.mxu0 }
  0xdd   : > { %v392_v51 = vadd.f32 %v391_v50, %v314_v48 }
  0xde   : > { %v393_v52 = vpop.f32.mrf.mxu0 }
  0xdf   : > { %v394_v53 = vadd.f32 %v393_v52, %v318_v49 }
  0xe1   : > { %636 = vtanh.f32 %v394_v53 }
  0xe2   : > { %638 = vtanh.f32 %v392_v51 }
  0xee   : > { %v637_v54 = vpop.eup %636 }
  0xef   : > { %v639_v55 = vpop.eup %638  ;;  %469 = vmatprep.mubr.f32.mxu1 %v637_v54 }
  0xf0   : > { %470 = vmatmul.mubr.f32.vlgmr.msra.gmra.mxu1 %v639_v55 }
 0x1b0   : > { %v623_v58 = vpop.f32.mrf.mxu1 }
 0x1b2   : > { %v624_v60 = vpop.f32.mrf.mxu1 }
 0x1b3   : > { %v625_v61 = vadd.f32 %v624_v60, %v623_v58 }
 0x1b5   : > { %v472_v63 = vadd.f32 %v625_v61, %v585_v59 }
 0x1b7   : > { %v483_v0 = vmul.f32 %v587_v62, %v472_v63  ;;  %508 = vst.msk [vmem:[%s507_s12] sm:$0xff] %vm485_vm3, %v472_v63 }
 0x1b9   : > { %v486_v1 = vsel %vm485_vm3, %v483_v0, 0.0  ;;  %v497_v2 = vmul.f32 %v483_v0, %v483_v0 }
 0x1ba   : > { %v487_v3 = vrot.slane %v486_v1, 4 }
 0x1bb   : > { %v498_v4 = vsel %vm485_vm3, %v497_v2, 0.0 }
 0x1bc   : > { %v488_v6 = vadd.f32 %v487_v3, %v486_v1  ;;  %v499_v7 = vrot.slane %v498_v4, 4 }
 0x1be   : > { %v489_v8 = vrot.slane %v488_v6, 2  ;;  %v500_v9 = vadd.f32 %v499_v7, %v498_v4 }
 0x1c0   : > { %v490_v5 = vadd.f32 %v489_v8, %v488_v6  ;;  %v501_v10 = vrot.slane %v500_v9, 2 }
 0x1c2   : > { %v491_v11 = vrot.slane %v490_v5, 1  ;;  %v502_v12 = vadd.f32 %v501_v10, %v500_v9 }
 0x1c4   : > { %v492_v14 = vadd.f32 %v491_v11, %v490_v5  ;;  %v503_v15 = vrot.slane %v502_v12, 1 }
 0x1c6   : > { %v493_v17 = vadd.f32 %v492_v14, %v484_v13  ;;  %v504_v18 = vadd.f32 %v503_v15, %v502_v12  ;;  %512 = sbr.rel (%p588_p5) target bundleno = 499 (0x1f3), region = 56 }
 0x1c8   : > { %495 = vst.msk [vmem:[#allocation2] sm:$0x1] %vm494_vm4, %v493_v17  ;;  %v505_v19 = vadd.f32 %v504_v18, %v496_v16 }
 0x1ca   : > { %506 = vst.msk [vmem:[#allocation3] sm:$0x1] %vm494_vm4, %v505_v19 }
 0x1cb   : > { %v521_v27 = vld [vmem:[%s880_s5] sm:$0x1]  ;;  %v527_v32 = vld [vmem:[%s882_s7 + $0x8] sm:$0xff] }
 0x1cc   : > { %v523_v30 = vld [vmem:[%s881_s6] sm:$0x1] }
 0x1cd   : > { %v526_v31 = vld [vmem:[%s882_s7] sm:$0xff] }
 0x1cf   : > { %v513_v20 = vld [vmem:[#allocation2] sm:$0x1] }
 0x1d0   : > { %v514_v22 = vmul.f32 0.0625, %v513_v20 }
 0x1d1   : > { %v515_v21 = vld [vmem:[#allocation3] sm:$0x1] }
 0x1d2   : > { %v516_v23 = vmul.f32 0.0625, %v515_v21  ;;  %v517_v24 = vmul.f32 %v514_v22, %v514_v22 }
 0x1d4   : > { %v518_v25 = vsub.f32 %v516_v23, %v517_v24 }
 0x1d6   : > { %v519_v26 = vadd.f32 1e-05, %v518_v25 }
 0x1d8   : > { %640 = vrsqrt.f32 %v519_v26 }
 0x1e5   : > { %v641_v28 = vpop.eup %640 }
 0x1e6   : > { %v522_v29 = vmul.f32 %v641_v28, %v521_v27 }
 0x1e8   : > { %v524_v33 = vmul.f32 %v522_v29, %v514_v22  ;;  %v532_v34 = vrot.slane %v522_v29, %v832_v45 }
 0x1ea   : > { %v525_v35 = vsub.f32 %v523_v30, %v524_v33  ;;  %v534_v36 = vmul.f32 %v532_v34, %v526_v31  ;;  %v535_v37 = vmul.f32 %v532_v34, %v527_v32 }
 0x1ec   : > { %v540_v38 = vrot.slane %v525_v35, %v832_v45 }
 0x1ee   : > { %v542_v39 = vadd.f32 %v540_v38, %v534_v36  ;;  %v543_v40 = vadd.f32 %v540_v38, %v535_v37 }
 0x1f0   : > { %v544_v41 = vmax.f32 %v542_v39, 0.0  ;;  %v545_v42 = vmax.f32 %v543_v40, 0.0 }
 0x1f2   : > { %546 = vst.msk [vmem:[%s882_s7] sm:$0xff] %vm485_vm3, %v544_v41  ;;  %547 = vst.msk [vmem:[%s882_s7 + $0x8] sm:$0xff] %vm485_vm3, %v545_v42 }
 0x1f3 PF: > { %s17_s24 = sadd.s32 1, %s648_s24  }
 0x1f4   : > { %p14_p6 = scmp.ge.s32.totalorder %s17_s24, 4  }
 0x1f6   :  { %16 = sbr.rel (!%p14_p6) target bundleno = 1 (0x1), region = 83 }

</bundles_post_ra>
